<compile_context>
chip_gen: v6e
topology: v6e:2x2x1
jax: 0.10.0
libtpu: 0.0.40
codegen_flags: <defaults>
</compile_context>

<pallas_src>
import functools

import jax
import jax.numpy as jnp
from jax.experimental import pallas as pl
from jax.experimental.pallas import tpu as pltpu  # noqa: F401

# ---- small, module-consistent sizes -------------------------------------
BATCH = 2
SEQ = 8
INPUT_SIZE = 32
HIDDEN = 32
NUM_HEADS = 4
HEAD_DIM = HIDDEN // NUM_HEADS


def pack_mha_params(params, num_heads):
    """One-time (init-time) packing of the four Linear layers.

    Returns (w_qkv_blockdiag, b_qkv, wo, bo):
      w_qkv_blockdiag : (3*Din, 3*H) block-diag of [Wq/sqrt(hd), Wk, Wv]
      b_qkv           : (1, 3*H)     packed        [bq/sqrt(hd), bk, bv]
    The 1/sqrt(head_dim) attention scale is folded into the Q projection.
    """
    wq, bq, wk, bk, wv, bv, wo, bo = params
    din, h = wq.shape
    hd = h // num_heads
    scale = 1.0 / (hd ** 0.5)
    w_bd = jnp.zeros((3 * din, 3 * h), jnp.float32)
    w_bd = w_bd.at[0:din, 0:h].set(wq * scale)
    w_bd = w_bd.at[din:2 * din, h:2 * h].set(wk)
    w_bd = w_bd.at[2 * din:3 * din, 2 * h:3 * h].set(wv)
    b_qkv = jnp.concatenate([bq * scale, bk, bv], axis=-1)
    return w_bd, b_qkv, wo, bo


def _mha_kernel(q_ref, k_ref, v_ref, w_ref, b_ref, wo_ref, bo_ref, out_ref, *,
                batch, seq, din, hidden, num_heads):
    hd = hidden // num_heads
    bs = batch * seq

    # Leading-dim merges only (layout-preserving, no relayout).
    q_in = q_ref[...].reshape(bs, din)
    k_in = k_ref[...].reshape(bs, din)
    v_in = v_ref[...].reshape(bs, din)

    # Lane concat into one lane-dense operand (B*S, 3*Din); XLU slot is idle.
    x = jnp.concatenate([q_in, k_in, v_in], axis=-1)

    # Fused block-diagonal Q/K/V projection: ONE MXU push.
    # proj lanes = [Q | K | V], each `hidden` wide, heads contiguous inside;
    # Q is already pre-scaled by 1/sqrt(head_dim).
    proj = jnp.dot(x, w_ref[...], preferred_element_type=jnp.float32) + b_ref[...]

    # Per-(batch, head) scaled dot-product attention — the irreducible
    # remainder of tiny matmuls (2 * B * num_heads pushes).
    # TODO(synk): mask branch (masked_fill with -1e20) not implemented; the
    # host model always calls forward with mask=None.
    ctx_rows = []
    for b in range(batch):
        r0, r1 = b * seq, (b + 1) * seq
        head_ctx = []
        for h in range(num_heads):
            c0 = h * hd
            q_bh = proj[r0:r1, c0:c0 + hd]                            # (S, hd)
            k_bh = proj[r0:r1, hidden + c0:hidden + c0 + hd]          # (S, hd)
            v_bh = proj[r0:r1, 2 * hidden + c0:2 * hidden + c0 + hd]  # (S, hd)
            e = jnp.dot(q_bh, k_bh.T, preferred_element_type=jnp.float32)
            e = e - jnp.max(e, axis=-1, keepdims=True)
            p = jnp.exp(e)
            p = p * pl.reciprocal(jnp.sum(p, axis=-1, keepdims=True),
                                  approx=True)
            head_ctx.append(
                jnp.dot(p, v_bh, preferred_element_type=jnp.float32))
        ctx_rows.append(jnp.concatenate(head_ctx, axis=-1))            # (S, H)
    ctx = jnp.concatenate(ctx_rows, axis=0)                            # (B*S, H)

    # Fused output projection: ONE MXU push.
    y = jnp.dot(ctx, wo_ref[...], preferred_element_type=jnp.float32) + bo_ref[...]
    out_ref[...] = y.astype(out_ref.dtype)


@jax.jit
def multi_head_attention(query, key, value, packed_params):
    """query/key/value: (B, S, Din). packed_params from pack_mha_params()."""
    w_bd, b_qkv, wo, bo = packed_params
    batch, seq, din = query.shape
    hidden = wo.shape[0]
    kernel = functools.partial(_mha_kernel, batch=batch, seq=seq, din=din,
                               hidden=hidden, num_heads=NUM_HEADS)
    # Single invocation, no grid: every operand (< 50 KiB total) lives whole
    # in VMEM on all generations; adding a grid would only add step overhead.
    out = pl.pallas_call(
        kernel,
        out_shape=jax.ShapeDtypeStruct((batch * seq, hidden), jnp.float32),
    )(query, key, value, w_bd, b_qkv, wo, bo)
    return out.reshape(batch, seq, hidden)


def reference_mha(query, key, value, params):
    """Pure-JAX reference replicating the PyTorch forward (mask=None path)."""
    wq, bq, wk, bk, wv, bv, wo, bo = params
    B, S, _ = query.shape
    Q = query @ wq + bq[0]
    K = key @ wk + bk[0]
    V = value @ wv + bv[0]
    Q = Q.reshape(B, S, NUM_HEADS, HEAD_DIM).transpose(0, 2, 1, 3)
    K = K.reshape(B, S, NUM_HEADS, HEAD_DIM).transpose(0, 2, 1, 3)
    V = V.reshape(B, S, NUM_HEADS, HEAD_DIM).transpose(0, 2, 1, 3)
    energy = jnp.einsum("bhqd,bhkd->bhqk", Q, K) / (HEAD_DIM ** 0.5)
    attn = jax.nn.softmax(energy, axis=-1)
    x = jnp.einsum("bhqk,bhkd->bhqd", attn, V)
    x = x.transpose(0, 2, 1, 3).reshape(B, S, HIDDEN)
    return x @ wo + bo[0]


if __name__ == "__main__":
    key0 = jax.random.PRNGKey(0)
    ks = jax.random.split(key0, 12)

    # deterministic synthetic parameters (Linear weights stored as (in, out))
    def init_linear(kw, kb, din, dout):
        bound = 1.0 / (din ** 0.5)
        w = jax.random.uniform(kw, (din, dout), jnp.float32, -bound, bound)
        b = jax.random.uniform(kb, (1, dout), jnp.float32, -bound, bound)
        return w, b

    wq, bq = init_linear(ks[0], ks[1], INPUT_SIZE, HIDDEN)
    wk, bk = init_linear(ks[2], ks[3], INPUT_SIZE, HIDDEN)
    wv, bv = init_linear(ks[4], ks[5], INPUT_SIZE, HIDDEN)
    wo, bo = init_linear(ks[6], ks[7], HIDDEN, HIDDEN)
    params = (wq, bq, wk, bk, wv, bv, wo, bo)

    # One-time weight packing (hoisted out of the per-call path).
    packed = pack_mha_params(params, NUM_HEADS)
    packed = jax.tree_util.tree_map(jax.block_until_ready, packed)

    query = jax.random.normal(ks[8], (BATCH, SEQ, INPUT_SIZE), jnp.float32)
    key_in = jax.random.normal(ks[9], (BATCH, SEQ, INPUT_SIZE), jnp.float32)
    value = jax.random.normal(ks[10], (BATCH, SEQ, INPUT_SIZE), jnp.float32)

    out = multi_head_attention(query, key_in, value, packed)
    out = jax.block_until_ready(out)

    ref = reference_mha(query, key_in, value, params)
    assert out.shape == (BATCH, SEQ, HIDDEN)
    # slightly relaxed tolerance: softmax uses the EUP approximate reciprocal
    assert jnp.allclose(out, ref, atol=2e-3, rtol=2e-3), "mismatch vs JAX reference"
    print("KERNEL_OK")
</pallas_src>

<mosaic_0001>
module attributes {stable_mosaic.version = 11 : i64} {
  func.func @_mha_kernel(%arg0: memref<2x8x32xf32, #tpu.memory_space<vmem>>, %arg1: memref<2x8x32xf32, #tpu.memory_space<vmem>>, %arg2: memref<2x8x32xf32, #tpu.memory_space<vmem>>, %arg3: memref<96x96xf32, #tpu.memory_space<vmem>>, %arg4: memref<1x96xf32, #tpu.memory_space<vmem>>, %arg5: memref<32x32xf32, #tpu.memory_space<vmem>>, %arg6: memref<1x32xf32, #tpu.memory_space<vmem>>, %arg7: memref<16x32xf32, #tpu.memory_space<vmem>>) attributes {dimension_semantics = [], scalar_prefetch = 0 : i64, scratch_operands = 0 : i64, tpu.core_type = #tpu.core_type<tc>} {
    %c0 = arith.constant 0 : index
    %c0_0 = arith.constant 0 : index
    %c0_1 = arith.constant 0 : index
    %0 = vector.load %arg0[%c0, %c0_0, %c0_1] : memref<2x8x32xf32, #tpu.memory_space<vmem>>, vector<2x8x32xf32>
    %1 = vector.shape_cast %0 : vector<2x8x32xf32> to vector<16x32xf32>
    %c0_2 = arith.constant 0 : index
    %c0_3 = arith.constant 0 : index
    %c0_4 = arith.constant 0 : index
    %2 = vector.load %arg1[%c0_2, %c0_3, %c0_4] : memref<2x8x32xf32, #tpu.memory_space<vmem>>, vector<2x8x32xf32>
    %3 = vector.shape_cast %2 : vector<2x8x32xf32> to vector<16x32xf32>
    %c0_5 = arith.constant 0 : index
    %c0_6 = arith.constant 0 : index
    %c0_7 = arith.constant 0 : index
    %4 = vector.load %arg2[%c0_5, %c0_6, %c0_7] : memref<2x8x32xf32, #tpu.memory_space<vmem>>, vector<2x8x32xf32>
    %5 = vector.shape_cast %4 : vector<2x8x32xf32> to vector<16x32xf32>
    %6 = tpu.concatenate %1, %3, %5 in 1 : vector<16x32xf32>, vector<16x32xf32>, vector<16x32xf32> -> vector<16x96xf32>
    %c0_8 = arith.constant 0 : index
    %c0_9 = arith.constant 0 : index
    %7 = vector.load %arg3[%c0_8, %c0_9] : memref<96x96xf32, #tpu.memory_space<vmem>>, vector<96x96xf32>
    %cst = arith.constant dense<0.000000e+00> : vector<16x96xf32>
    %8 = tpu.matmul %6, %7, %cst {dimension_numbers = #tpu.dot_dimension_numbers<[1], [0], [0], [1], [0, 0, 1, 1], [], []>} : vector<16x96xf32>, vector<96x96xf32>, vector<16x96xf32> -> vector<16x96xf32>
    %c0_10 = arith.constant 0 : index
    %c0_11 = arith.constant 0 : index
    %9 = vector.load %arg4[%c0_10, %c0_11] : memref<1x96xf32, #tpu.memory_space<vmem>>, vector<1x96xf32>
    %10 = vector.broadcast %9 : vector<1x96xf32> to vector<16x96xf32>
    %11 = arith.addf %8, %10 : vector<16x96xf32>
    %12 = vector.extract_strided_slice %11 {offsets = [0, 0], sizes = [8, 8], strides = [1, 1]} : vector<16x96xf32> to vector<8x8xf32>
    %13 = vector.extract_strided_slice %11 {offsets = [0, 32], sizes = [8, 8], strides = [1, 1]} : vector<16x96xf32> to vector<8x8xf32>
    %14 = vector.extract_strided_slice %11 {offsets = [0, 64], sizes = [8, 8], strides = [1, 1]} : vector<16x96xf32> to vector<8x8xf32>
    %15 = tpu.transpose %13, [1, 0] : vector<8x8xf32> -> vector<8x8xf32>
    %cst_12 = arith.constant dense<0.000000e+00> : vector<8x8xf32>
    %16 = tpu.matmul %12, %15, %cst_12 {dimension_numbers = #tpu.dot_dimension_numbers<[1], [0], [0], [1], [0, 0, 1, 1], [], []>} : vector<8x8xf32>, vector<8x8xf32>, vector<8x8xf32> -> vector<8x8xf32>
    %cst_13 = arith.constant dense<0xFF800000> : vector<8xf32>
    %17 = vector.multi_reduction <maximumf>, %16, %cst_13 [1] : vector<8x8xf32> to vector<8xf32>
    %18 = vector.shape_cast %17 : vector<8xf32> to vector<8x1xf32>
    %19 = vector.broadcast %18 : vector<8x1xf32> to vector<8x8xf32>
    %20 = arith.subf %16, %19 : vector<8x8xf32>
    %21 = math.exp %20 : vector<8x8xf32>
    %cst_14 = arith.constant dense<0.000000e+00> : vector<8xf32>
    %22 = vector.multi_reduction <add>, %21, %cst_14 [1] : vector<8x8xf32> to vector<8xf32>
    %23 = vector.shape_cast %22 : vector<8xf32> to vector<8x1xf32>
    %24 = tpu.reciprocal %23 {approx = true} : vector<8x1xf32> -> vector<8x1xf32>
    %25 = vector.broadcast %24 : vector<8x1xf32> to vector<8x8xf32>
    %26 = arith.mulf %21, %25 : vector<8x8xf32>
    %cst_15 = arith.constant dense<0.000000e+00> : vector<8x8xf32>
    %27 = tpu.matmul %26, %14, %cst_15 {dimension_numbers = #tpu.dot_dimension_numbers<[1], [0], [0], [1], [0, 0, 1, 1], [], []>} : vector<8x8xf32>, vector<8x8xf32>, vector<8x8xf32> -> vector<8x8xf32>
    %28 = vector.extract_strided_slice %11 {offsets = [0, 8], sizes = [8, 8], strides = [1, 1]} : vector<16x96xf32> to vector<8x8xf32>
    %29 = vector.extract_strided_slice %11 {offsets = [0, 40], sizes = [8, 8], strides = [1, 1]} : vector<16x96xf32> to vector<8x8xf32>
    %30 = vector.extract_strided_slice %11 {offsets = [0, 72], sizes = [8, 8], strides = [1, 1]} : vector<16x96xf32> to vector<8x8xf32>
    %31 = tpu.transpose %29, [1, 0] : vector<8x8xf32> -> vector<8x8xf32>
    %cst_16 = arith.constant dense<0.000000e+00> : vector<8x8xf32>
    %32 = tpu.matmul %28, %31, %cst_16 {dimension_numbers = #tpu.dot_dimension_numbers<[1], [0], [0], [1], [0, 0, 1, 1], [], []>} : vector<8x8xf32>, vector<8x8xf32>, vector<8x8xf32> -> vector<8x8xf32>
    %cst_17 = arith.constant dense<0xFF800000> : vector<8xf32>
    %33 = vector.multi_reduction <maximumf>, %32, %cst_17 [1] : vector<8x8xf32> to vector<8xf32>
    %34 = vector.shape_cast %33 : vector<8xf32> to vector<8x1xf32>
    %35 = vector.broadcast %34 : vector<8x1xf32> to vector<8x8xf32>
    %36 = arith.subf %32, %35 : vector<8x8xf32>
    %37 = math.exp %36 : vector<8x8xf32>
    %cst_18 = arith.constant dense<0.000000e+00> : vector<8xf32>
    %38 = vector.multi_reduction <add>, %37, %cst_18 [1] : vector<8x8xf32> to vector<8xf32>
    %39 = vector.shape_cast %38 : vector<8xf32> to vector<8x1xf32>
    %40 = tpu.reciprocal %39 {approx = true} : vector<8x1xf32> -> vector<8x1xf32>
    %41 = vector.broadcast %40 : vector<8x1xf32> to vector<8x8xf32>
    %42 = arith.mulf %37, %41 : vector<8x8xf32>
    %cst_19 = arith.constant dense<0.000000e+00> : vector<8x8xf32>
    %43 = tpu.matmul %42, %30, %cst_19 {dimension_numbers = #tpu.dot_dimension_numbers<[1], [0], [0], [1], [0, 0, 1, 1], [], []>} : vector<8x8xf32>, vector<8x8xf32>, vector<8x8xf32> -> vector<8x8xf32>
    %44 = vector.extract_strided_slice %11 {offsets = [0, 16], sizes = [8, 8], strides = [1, 1]} : vector<16x96xf32> to vector<8x8xf32>
    %45 = vector.extract_strided_slice %11 {offsets = [0, 48], sizes = [8, 8], strides = [1, 1]} : vector<16x96xf32> to vector<8x8xf32>
    %46 = vector.extract_strided_slice %11 {offsets = [0, 80], sizes = [8, 8], strides = [1, 1]} : vector<16x96xf32> to vector<8x8xf32>
    %47 = tpu.transpose %45, [1, 0] : vector<8x8xf32> -> vector<8x8xf32>
    %cst_20 = arith.constant dense<0.000000e+00> : vector<8x8xf32>
    %48 = tpu.matmul %44, %47, %cst_20 {dimension_numbers = #tpu.dot_dimension_numbers<[1], [0], [0], [1], [0, 0, 1, 1], [], []>} : vector<8x8xf32>, vector<8x8xf32>, vector<8x8xf32> -> vector<8x8xf32>
    %cst_21 = arith.constant dense<0xFF800000> : vector<8xf32>
    %49 = vector.multi_reduction <maximumf>, %48, %cst_21 [1] : vector<8x8xf32> to vector<8xf32>
    %50 = vector.shape_cast %49 : vector<8xf32> to vector<8x1xf32>
    %51 = vector.broadcast %50 : vector<8x1xf32> to vector<8x8xf32>
    %52 = arith.subf %48, %51 : vector<8x8xf32>
    %53 = math.exp %52 : vector<8x8xf32>
    %cst_22 = arith.constant dense<0.000000e+00> : vector<8xf32>
    %54 = vector.multi_reduction <add>, %53, %cst_22 [1] : vector<8x8xf32> to vector<8xf32>
    %55 = vector.shape_cast %54 : vector<8xf32> to vector<8x1xf32>
    %56 = tpu.reciprocal %55 {approx = true} : vector<8x1xf32> -> vector<8x1xf32>
    %57 = vector.broadcast %56 : vector<8x1xf32> to vector<8x8xf32>
    %58 = arith.mulf %53, %57 : vector<8x8xf32>
    %cst_23 = arith.constant dense<0.000000e+00> : vector<8x8xf32>
    %59 = tpu.matmul %58, %46, %cst_23 {dimension_numbers = #tpu.dot_dimension_numbers<[1], [0], [0], [1], [0, 0, 1, 1], [], []>} : vector<8x8xf32>, vector<8x8xf32>, vector<8x8xf32> -> vector<8x8xf32>
    %60 = vector.extract_strided_slice %11 {offsets = [0, 24], sizes = [8, 8], strides = [1, 1]} : vector<16x96xf32> to vector<8x8xf32>
    %61 = vector.extract_strided_slice %11 {offsets = [0, 56], sizes = [8, 8], strides = [1, 1]} : vector<16x96xf32> to vector<8x8xf32>
    %62 = vector.extract_strided_slice %11 {offsets = [0, 88], sizes = [8, 8], strides = [1, 1]} : vector<16x96xf32> to vector<8x8xf32>
    %63 = tpu.transpose %61, [1, 0] : vector<8x8xf32> -> vector<8x8xf32>
    %cst_24 = arith.constant dense<0.000000e+00> : vector<8x8xf32>
    %64 = tpu.matmul %60, %63, %cst_24 {dimension_numbers = #tpu.dot_dimension_numbers<[1], [0], [0], [1], [0, 0, 1, 1], [], []>} : vector<8x8xf32>, vector<8x8xf32>, vector<8x8xf32> -> vector<8x8xf32>
    %cst_25 = arith.constant dense<0xFF800000> : vector<8xf32>
    %65 = vector.multi_reduction <maximumf>, %64, %cst_25 [1] : vector<8x8xf32> to vector<8xf32>
    %66 = vector.shape_cast %65 : vector<8xf32> to vector<8x1xf32>
    %67 = vector.broadcast %66 : vector<8x1xf32> to vector<8x8xf32>
    %68 = arith.subf %64, %67 : vector<8x8xf32>
    %69 = math.exp %68 : vector<8x8xf32>
    %cst_26 = arith.constant dense<0.000000e+00> : vector<8xf32>
    %70 = vector.multi_reduction <add>, %69, %cst_26 [1] : vector<8x8xf32> to vector<8xf32>
    %71 = vector.shape_cast %70 : vector<8xf32> to vector<8x1xf32>
    %72 = tpu.reciprocal %71 {approx = true} : vector<8x1xf32> -> vector<8x1xf32>
    %73 = vector.broadcast %72 : vector<8x1xf32> to vector<8x8xf32>
    %74 = arith.mulf %69, %73 : vector<8x8xf32>
    %cst_27 = arith.constant dense<0.000000e+00> : vector<8x8xf32>
    %75 = tpu.matmul %74, %62, %cst_27 {dimension_numbers = #tpu.dot_dimension_numbers<[1], [0], [0], [1], [0, 0, 1, 1], [], []>} : vector<8x8xf32>, vector<8x8xf32>, vector<8x8xf32> -> vector<8x8xf32>
    %76 = tpu.concatenate %27, %43, %59, %75 in 1 : vector<8x8xf32>, vector<8x8xf32>, vector<8x8xf32>, vector<8x8xf32> -> vector<8x32xf32>
    %77 = vector.extract_strided_slice %11 {offsets = [8, 0], sizes = [8, 8], strides = [1, 1]} : vector<16x96xf32> to vector<8x8xf32>
    %78 = vector.extract_strided_slice %11 {offsets = [8, 32], sizes = [8, 8], strides = [1, 1]} : vector<16x96xf32> to vector<8x8xf32>
    %79 = vector.extract_strided_slice %11 {offsets = [8, 64], sizes = [8, 8], strides = [1, 1]} : vector<16x96xf32> to vector<8x8xf32>
    %80 = tpu.transpose %78, [1, 0] : vector<8x8xf32> -> vector<8x8xf32>
    %cst_28 = arith.constant dense<0.000000e+00> : vector<8x8xf32>
    %81 = tpu.matmul %77, %80, %cst_28 {dimension_numbers = #tpu.dot_dimension_numbers<[1], [0], [0], [1], [0, 0, 1, 1], [], []>} : vector<8x8xf32>, vector<8x8xf32>, vector<8x8xf32> -> vector<8x8xf32>
    %cst_29 = arith.constant dense<0xFF800000> : vector<8xf32>
    %82 = vector.multi_reduction <maximumf>, %81, %cst_29 [1] : vector<8x8xf32> to vector<8xf32>
    %83 = vector.shape_cast %82 : vector<8xf32> to vector<8x1xf32>
    %84 = vector.broadcast %83 : vector<8x1xf32> to vector<8x8xf32>
    %85 = arith.subf %81, %84 : vector<8x8xf32>
    %86 = math.exp %85 : vector<8x8xf32>
    %cst_30 = arith.constant dense<0.000000e+00> : vector<8xf32>
    %87 = vector.multi_reduction <add>, %86, %cst_30 [1] : vector<8x8xf32> to vector<8xf32>
    %88 = vector.shape_cast %87 : vector<8xf32> to vector<8x1xf32>
    %89 = tpu.reciprocal %88 {approx = true} : vector<8x1xf32> -> vector<8x1xf32>
    %90 = vector.broadcast %89 : vector<8x1xf32> to vector<8x8xf32>
    %91 = arith.mulf %86, %90 : vector<8x8xf32>
    %cst_31 = arith.constant dense<0.000000e+00> : vector<8x8xf32>
    %92 = tpu.matmul %91, %79, %cst_31 {dimension_numbers = #tpu.dot_dimension_numbers<[1], [0], [0], [1], [0, 0, 1, 1], [], []>} : vector<8x8xf32>, vector<8x8xf32>, vector<8x8xf32> -> vector<8x8xf32>
    %93 = vector.extract_strided_slice %11 {offsets = [8, 8], sizes = [8, 8], strides = [1, 1]} : vector<16x96xf32> to vector<8x8xf32>
    %94 = vector.extract_strided_slice %11 {offsets = [8, 40], sizes = [8, 8], strides = [1, 1]} : vector<16x96xf32> to vector<8x8xf32>
    %95 = vector.extract_strided_slice %11 {offsets = [8, 72], sizes = [8, 8], strides = [1, 1]} : vector<16x96xf32> to vector<8x8xf32>
    %96 = tpu.transpose %94, [1, 0] : vector<8x8xf32> -> vector<8x8xf32>
    %cst_32 = arith.constant dense<0.000000e+00> : vector<8x8xf32>
    %97 = tpu.matmul %93, %96, %cst_32 {dimension_numbers = #tpu.dot_dimension_numbers<[1], [0], [0], [1], [0, 0, 1, 1], [], []>} : vector<8x8xf32>, vector<8x8xf32>, vector<8x8xf32> -> vector<8x8xf32>
    %cst_33 = arith.constant dense<0xFF800000> : vector<8xf32>
    %98 = vector.multi_reduction <maximumf>, %97, %cst_33 [1] : vector<8x8xf32> to vector<8xf32>
    %99 = vector.shape_cast %98 : vector<8xf32> to vector<8x1xf32>
    %100 = vector.broadcast %99 : vector<8x1xf32> to vector<8x8xf32>
    %101 = arith.subf %97, %100 : vector<8x8xf32>
    %102 = math.exp %101 : vector<8x8xf32>
    %cst_34 = arith.constant dense<0.000000e+00> : vector<8xf32>
    %103 = vector.multi_reduction <add>, %102, %cst_34 [1] : vector<8x8xf32> to vector<8xf32>
    %104 = vector.shape_cast %103 : vector<8xf32> to vector<8x1xf32>
    %105 = tpu.reciprocal %104 {approx = true} : vector<8x1xf32> -> vector<8x1xf32>
    %106 = vector.broadcast %105 : vector<8x1xf32> to vector<8x8xf32>
    %107 = arith.mulf %102, %106 : vector<8x8xf32>
    %cst_35 = arith.constant dense<0.000000e+00> : vector<8x8xf32>
    %108 = tpu.matmul %107, %95, %cst_35 {dimension_numbers = #tpu.dot_dimension_numbers<[1], [0], [0], [1], [0, 0, 1, 1], [], []>} : vector<8x8xf32>, vector<8x8xf32>, vector<8x8xf32> -> vector<8x8xf32>
    %109 = vector.extract_strided_slice %11 {offsets = [8, 16], sizes = [8, 8], strides = [1, 1]} : vector<16x96xf32> to vector<8x8xf32>
    %110 = vector.extract_strided_slice %11 {offsets = [8, 48], sizes = [8, 8], strides = [1, 1]} : vector<16x96xf32> to vector<8x8xf32>
    %111 = vector.extract_strided_slice %11 {offsets = [8, 80], sizes = [8, 8], strides = [1, 1]} : vector<16x96xf32> to vector<8x8xf32>
    %112 = tpu.transpose %110, [1, 0] : vector<8x8xf32> -> vector<8x8xf32>
    %cst_36 = arith.constant dense<0.000000e+00> : vector<8x8xf32>
    %113 = tpu.matmul %109, %112, %cst_36 {dimension_numbers = #tpu.dot_dimension_numbers<[1], [0], [0], [1], [0, 0, 1, 1], [], []>} : vector<8x8xf32>, vector<8x8xf32>, vector<8x8xf32> -> vector<8x8xf32>
    %cst_37 = arith.constant dense<0xFF800000> : vector<8xf32>
    %114 = vector.multi_reduction <maximumf>, %113, %cst_37 [1] : vector<8x8xf32> to vector<8xf32>
    %115 = vector.shape_cast %114 : vector<8xf32> to vector<8x1xf32>
    %116 = vector.broadcast %115 : vector<8x1xf32> to vector<8x8xf32>
    %117 = arith.subf %113, %116 : vector<8x8xf32>
    %118 = math.exp %117 : vector<8x8xf32>
    %cst_38 = arith.constant dense<0.000000e+00> : vector<8xf32>
    %119 = vector.multi_reduction <add>, %118, %cst_38 [1] : vector<8x8xf32> to vector<8xf32>
    %120 = vector.shape_cast %119 : vector<8xf32> to vector<8x1xf32>
    %121 = tpu.reciprocal %120 {approx = true} : vector<8x1xf32> -> vector<8x1xf32>
    %122 = vector.broadcast %121 : vector<8x1xf32> to vector<8x8xf32>
    %123 = arith.mulf %118, %122 : vector<8x8xf32>
    %cst_39 = arith.constant dense<0.000000e+00> : vector<8x8xf32>
    %124 = tpu.matmul %123, %111, %cst_39 {dimension_numbers = #tpu.dot_dimension_numbers<[1], [0], [0], [1], [0, 0, 1, 1], [], []>} : vector<8x8xf32>, vector<8x8xf32>, vector<8x8xf32> -> vector<8x8xf32>
    %125 = vector.extract_strided_slice %11 {offsets = [8, 24], sizes = [8, 8], strides = [1, 1]} : vector<16x96xf32> to vector<8x8xf32>
    %126 = vector.extract_strided_slice %11 {offsets = [8, 56], sizes = [8, 8], strides = [1, 1]} : vector<16x96xf32> to vector<8x8xf32>
    %127 = vector.extract_strided_slice %11 {offsets = [8, 88], sizes = [8, 8], strides = [1, 1]} : vector<16x96xf32> to vector<8x8xf32>
    %128 = tpu.transpose %126, [1, 0] : vector<8x8xf32> -> vector<8x8xf32>
    %cst_40 = arith.constant dense<0.000000e+00> : vector<8x8xf32>
    %129 = tpu.matmul %125, %128, %cst_40 {dimension_numbers = #tpu.dot_dimension_numbers<[1], [0], [0], [1], [0, 0, 1, 1], [], []>} : vector<8x8xf32>, vector<8x8xf32>, vector<8x8xf32> -> vector<8x8xf32>
    %cst_41 = arith.constant dense<0xFF800000> : vector<8xf32>
    %130 = vector.multi_reduction <maximumf>, %129, %cst_41 [1] : vector<8x8xf32> to vector<8xf32>
    %131 = vector.shape_cast %130 : vector<8xf32> to vector<8x1xf32>
    %132 = vector.broadcast %131 : vector<8x1xf32> to vector<8x8xf32>
    %133 = arith.subf %129, %132 : vector<8x8xf32>
    %134 = math.exp %133 : vector<8x8xf32>
    %cst_42 = arith.constant dense<0.000000e+00> : vector<8xf32>
    %135 = vector.multi_reduction <add>, %134, %cst_42 [1] : vector<8x8xf32> to vector<8xf32>
    %136 = vector.shape_cast %135 : vector<8xf32> to vector<8x1xf32>
    %137 = tpu.reciprocal %136 {approx = true} : vector<8x1xf32> -> vector<8x1xf32>
    %138 = vector.broadcast %137 : vector<8x1xf32> to vector<8x8xf32>
    %139 = arith.mulf %134, %138 : vector<8x8xf32>
    %cst_43 = arith.constant dense<0.000000e+00> : vector<8x8xf32>
    %140 = tpu.matmul %139, %127, %cst_43 {dimension_numbers = #tpu.dot_dimension_numbers<[1], [0], [0], [1], [0, 0, 1, 1], [], []>} : vector<8x8xf32>, vector<8x8xf32>, vector<8x8xf32> -> vector<8x8xf32>
    %141 = tpu.concatenate %92, %108, %124, %140 in 1 : vector<8x8xf32>, vector<8x8xf32>, vector<8x8xf32>, vector<8x8xf32> -> vector<8x32xf32>
    %142 = tpu.concatenate %76, %141 in 0 : vector<8x32xf32>, vector<8x32xf32> -> vector<16x32xf32>
    %c0_44 = arith.constant 0 : index
    %c0_45 = arith.constant 0 : index
    %143 = vector.load %arg5[%c0_44, %c0_45] : memref<32x32xf32, #tpu.memory_space<vmem>>, vector<32x32xf32>
    %cst_46 = arith.constant dense<0.000000e+00> : vector<16x32xf32>
    %144 = tpu.matmul %142, %143, %cst_46 {dimension_numbers = #tpu.dot_dimension_numbers<[1], [0], [0], [1], [0, 0, 1, 1], [], []>} : vector<16x32xf32>, vector<32x32xf32>, vector<16x32xf32> -> vector<16x32xf32>
    %c0_47 = arith.constant 0 : index
    %c0_48 = arith.constant 0 : index
    %145 = vector.load %arg6[%c0_47, %c0_48] : memref<1x32xf32, #tpu.memory_space<vmem>>, vector<1x32xf32>
    %146 = vector.broadcast %145 : vector<1x32xf32> to vector<16x32xf32>
    %147 = arith.addf %144, %146 : vector<16x32xf32>
    %c0_49 = arith.constant 0 : index
    %c0_50 = arith.constant 0 : index
    %148 = vector.load %arg7[%c0_49, %c0_50] : memref<16x32xf32, #tpu.memory_space<vmem>>, vector<16x32xf32>
    tpu.vector_store %arg7[%c0_49, %c0_50], %147 {strides = array<i32>} : memref<16x32xf32, #tpu.memory_space<vmem>>, vector<16x32xf32>,
    return
  }
}

</mosaic_0001>

<bundles_post_ra>
// kernel: multi_head_attention.1
= control target key start
LH: loop header
LB: loop body
LE: loop exit
PB: predicated region body
PF: predicated region fallthrough
CT: control target
= control target key end

     0   :  { %12 = vsyncpa [#allocation3], 0  ;;  %s2328_s0 = inlined_call_operand.hbm [shape: f32[2,8,32], index: 0, kind: input, shape index: {}]   ;;  %s2329_s1 = inlined_call_operand.hbm [shape: f32[2,8,32], index: 1, kind: input, shape index: {}]   ;;  %s2330_s2 = inlined_call_operand.hbm [shape: f32[2,8,32], index: 2, kind: input, shape index: {}]   ;;  %s2331_s3 = inlined_call_operand.hbm [shape: f32[96,96], index: 3, kind: input, shape index: {}]   ;;  %s2332_s4 = inlined_call_operand.vmem [shape: f32[1,96], index: 4, kind: input, shape index: {}]   ;;  %s2333_s5 = inlined_call_operand.hbm [shape: f32[32,32], index: 5, kind: input, shape index: {}]   ;;  %s2334_s6 = inlined_call_operand.vmem [shape: f32[1,32], index: 6, kind: input, shape index: {}]   ;;  %s2335_s7 = inlined_call_operand.hbm [shape: f32[16,32], index: 7, kind: output, shape index: {}]  }
   0x1   :  { %13 = vsyncpa [#allocation6], 0 }
   0x2   :  { %14 = vsyncpa [#allocation9], 0 }
   0x3   :  { %15 = vsyncpa [#allocation4], 0  ;;  %s2072_s24 = smov [#allocation5]   ;;  %s2073_s26 = smov [#allocation8]  }
   0x4   :  { %s33_s25 = sshll.u32 %s2072_s24, 4  ;;  %s57_s27 = sshll.u32 %s2073_s26, 4  ;;  %s34_s25 = int_to_ptr.vmem [resolvable:$true] %s33_s25  ;;  %s58_s27 = int_to_ptr.vmem [resolvable:$true] %s57_s27 }
   0x5   :  { %s1952_s28 = scalar_lea.vmem %s34_s25, 256  ;;  %p1957_p1 = scmp.lt.s32.totalorder %s34_s25, %s34_s25 }
   0x6   :  { %p1953_p0 = scmp.ne.s32.totalorder %s34_s25, %s1952_s28  ;;  %p1958_p2 = scmp.lt.s32.totalorder %s1952_s28, %s1952_s28 }
   0x8   :  { %p1959_p3 = por %p1958_p2, %p1957_p1 }
   0xa   :  { %p1960_p4 = pnand %p1959_p3, %p1953_p0 }
   0xc   :  { %1963 = shalt.err (!%p1960_p4)
}
   0xd   :  { %s2074_s29 = smov 128   ;;  %s2075_s30 = smov 8  }
   0xe   :  { %39 = dma.hbm_to_vmem [thread:$0]  %s2329_s1, 256, %s34_s25, [#allocation6], %s2074_s29, %s2074_s29, %s2075_s30  }
   0xf   :  { %s1972_s10 = scalar_lea.vmem %s58_s27, 1536  ;;  %p1977_p6 = scmp.lt.s32.totalorder %s58_s27, %s58_s27 }
  0x10   :  { %p1973_p5 = scmp.ne.s32.totalorder %s58_s27, %s1972_s10  ;;  %p1978_p7 = scmp.lt.s32.totalorder %s1972_s10, %s1972_s10 }
  0x12   :  { %p1979_p8 = por %p1978_p7, %p1977_p6 }
  0x14   :  { %p1980_p9 = pnand %p1979_p8, %p1973_p5 }
  0x16   :  { %1983 = shalt.err (!%p1980_p9)
}
  0x17   :  { %63 = dma.hbm_to_vmem [thread:$0]  %s2331_s3, 1536, %s58_s27, [#allocation9], %s2074_s29, %s2074_s29, %s2075_s30  }
  0x18   :  { %s2076_s13 = smov [#allocation2]   ;;  %s2077_s15 = smov [#allocation7]  }
  0x19   :  { %s21_s14 = sshll.u32 %s2076_s13, 4  ;;  %s45_s16 = sshll.u32 %s2077_s15, 4  ;;  %s22_s14 = int_to_ptr.vmem [resolvable:$true] %s21_s14  ;;  %s46_s16 = int_to_ptr.vmem [resolvable:$true] %s45_s16 }
  0x1a   :  { %s1992_s1 = scalar_lea.vmem %s22_s14, 256  ;;  %p1997_p11 = scmp.lt.s32.totalorder %s22_s14, %s22_s14 }
  0x1b   :  { %p1993_p10 = scmp.ne.s32.totalorder %s22_s14, %s1992_s1  ;;  %p1998_p12 = scmp.lt.s32.totalorder %s1992_s1, %s1992_s1 }
  0x1d   :  { %p1999_p13 = por %p1998_p12, %p1997_p11 }
  0x1f   :  { %p2000_p0 = pnand %p1999_p13, %p1993_p10 }
  0x21   :  { %2003 = shalt.err (!%p2000_p0)
}
  0x22   :  { %27 = dma.hbm_to_vmem [thread:$0]  %s2328_s0, 256, %s22_s14, [#allocation3], %s2074_s29, %s2074_s29, %s2075_s30  }
  0x23   :  { %s2012_s3 = scalar_lea.vmem %s46_s16, 256  ;;  %p2017_p2 = scmp.lt.s32.totalorder %s46_s16, %s46_s16 }
  0x24   :  { %p2013_p1 = scmp.ne.s32.totalorder %s46_s16, %s2012_s3  ;;  %p2018_p3 = scmp.lt.s32.totalorder %s2012_s3, %s2012_s3 }
  0x26   :  { %p2019_p4 = por %p2018_p3, %p2017_p2 }
  0x28   :  { %p2020_p5 = pnand %p2019_p4, %p2013_p1 }
  0x2a   :  { %2023 = shalt.err (!%p2020_p5)
}
  0x2b   :  { %51 = dma.hbm_to_vmem [thread:$0]  %s2330_s2, 256, %s46_s16, [#allocation6], %s2074_s29, %s2074_s29, %s2075_s30  }
  0x2c   :  { %s2078_s21 = smov [#allocation10]  }
  0x2d   :  { %s71_s22 = sshll.u32 %s2078_s21, 4  ;;  %s72_s22 = int_to_ptr.vmem [resolvable:$true] %s71_s22 }
  0x2e   :  { %s2032_s23 = scalar_lea.vmem %s72_s22, 512  ;;  %p2037_p7 = scmp.lt.s32.totalorder %s72_s22, %s72_s22 }
  0x2f   :  { %p2033_p6 = scmp.ne.s32.totalorder %s72_s22, %s2032_s23  ;;  %p2038_p8 = scmp.lt.s32.totalorder %s2032_s23, %s2032_s23 }
  0x31   :  { %p2039_p9 = por %p2038_p8, %p2037_p7 }
  0x33   :  { %p2040_p10 = pnand %p2039_p9, %p2033_p6 }
  0x35   :  { %2043 = shalt.err (!%p2040_p10)
}
  0x36   :  { %77 = dma.hbm_to_vmem [thread:$0]  %s2333_s5, 512, %s72_s22, [#allocation9], %s2074_s29, %s2074_s29, %s2075_s30  }
  0x37   :  { %2064 = dma.done.wait [#allocation3], 256  }
  0x38   :  { %2065 = vsyncadd [#allocation3], 4294967040 }
  0x39   :  { %2066 = dma.done.wait [#allocation6], 512  }
  0x3a   :  { %2067 = vsyncadd [#allocation6], 4294966784 }
  0x3b   :  { %2068 = dma.done.wait [#allocation9], 2048  }
  0x3c   :  { %2069 = vsyncadd [#allocation9], 4294965248  ;;  %v97_v0 = vld [vmem:[#allocation5] sm:$0xff]  ;;  %v99_v1 = vld [vmem:[#allocation7] sm:$0xff]  ;;  %s2079_s2 = smov 32   ;;  %s2080_s25 = smov 64  }
  0x3d   :  { %103 = vrot.lane.b32.xlu0 %v97_v0, %s2079_s2  ;;  %111 = vrot.lane.b32.xlu1 %v99_v1, %s2080_s25  ;;  %v134_v2 = vld [vmem:[#allocation8 + $0x58] sm:$0xff]  ;;  %v133_v3 = vld [vmem:[#allocation8 + $0x50] sm:$0xff]  ;;  %v98_v4 = vld [vmem:[#allocation5 + $0x8] sm:$0xff]  ;;  %vm117_vm0 = vcmask 261120   ;;  %vm120_vm1 = vcmask 523264   ;;  %vm142_vm2 = vcmask 785408  }
  0x3e   :  { %v100_v5 = vld [vmem:[#allocation7 + $0x8] sm:$0xff]  ;;  %1770 = vmatprep.subr.mxu0 %v134_v2  ;;  %v132_v6 = vld [vmem:[#allocation8 + $0x48] sm:$0xff]  ;;  %v131_v7 = vld [vmem:[#allocation8 + $0x40] sm:$0xff]  ;;  %v2081_v26 = vmov 0.0   ;;  %vm2082_vm3 = vmmov 0   ;;  %s2083_s27 = smov 96  }
  0x3f   :  { %1771 = vmatpush3.msra.mxu0 %v134_v2  ;;  %v130_v8 = vld [vmem:[#allocation8 + $0x38] sm:$0xff]  ;;  %v129_v9 = vld [vmem:[#allocation8 + $0x30] sm:$0xff]  ;;  %v128_v10 = vld [vmem:[#allocation8 + $0x28] sm:$0xff]  ;;  %1797 = vmatprep.subr.mxu1 %v2081_v26  ;;  %vm227_vm4 = vcmask 64512   ;;  %s2085_s28 = smov 120   ;;  %s2086_s8 = smov 56  }
  0x40   :  { %1772 = vmatprep.subr.mxu0 %v133_v3  ;;  %v127_v11 = vld [vmem:[#allocation8 + $0x20] sm:$0xff]  ;;  %v126_v12 = vld [vmem:[#allocation8 + $0x18] sm:$0xff]  ;;  %v125_v13 = vld [vmem:[#allocation8 + $0x10] sm:$0xff]  ;;  %1799 = vmatprep.mubr.msk.f32.mxu1 %vm2082_vm3, %v2081_v26  ;;  %s2087_s9 = smov 112   ;;  %s2088_s10 = smov 80   ;;  %vm897_vm5 = vcmask 130048  }
  0x41   :  { %105 = vrot.lane.b32.xlu0 %v98_v4, %s2079_s2  ;;  %113 = vrot.lane.b32.xlu1 %v100_v5, %s2080_s25  ;;  %v124_v14 = vld [vmem:[#allocation8 + $0x8] sm:$0xff]  ;;  %v123_v15 = vld [vmem:[#allocation8] sm:$0xff]  ;;  %v95_v16 = vld [vmem:[#allocation2] sm:$0xff]  ;;  %s2089_s11 = smov 72   ;;  %s2090_s12 = smov 104   ;;  %vm899_vm6 = vcmask 195584  }
  0x42   :  { %1773 = vmatpush3.msra.mxu0 %v133_v3  ;;  %v96_v21 = vld [vmem:[#allocation2 + $0x8] sm:$0xff]  ;;  %v1688_v27 = vld [vmem:[%s2332_s4] ss:$0 sm:$0xff]  ;;  %s2084_s4 = smov 88   ;;  %s2091_s13 = smov 48  }
  0x43   :  { %1774 = vmatprep.subr.mxu0 %v132_v6  ;;  %s2092_s14 = smov 40   ;;  %s2093_s15 = smov 16  }
  0x44   :  { %1775 = vmatpush3.msra.mxu0 %v132_v6  ;;  %s2094_s16 = smov 24   ;;  %s2095_s18 = smov [#allocation11]  }
  0x45   :  { %1776 = vmatprep.subr.mxu0 %v131_v7  ;;  %s1674_s3 = sshll.u32 %s2095_s18, 4  ;;  %s1675_s3 = int_to_ptr.vmem [resolvable:$true] %s1674_s3 }
  0x46   :  { %1777 = vmatpush3.msra.mxu0 %v131_v7  ;;  %s2044_s19 = scalar_lea.vmem %s1675_s3, 256  ;;  %p2049_p12 = scmp.lt.s32.totalorder %s1675_s3, %s1675_s3 }
  0x47   :  { %1778 = vmatprep.subr.mxu0 %v130_v8  ;;  %p2045_p11 = scmp.ne.s32.totalorder %s1675_s3, %s2044_s19  ;;  %p2050_p13 = scmp.lt.s32.totalorder %s2044_s19, %s2044_s19 }
  0x48   :  { %1779 = vmatpush3.msra.mxu0 %v130_v8 }
  0x49   :  { %1780 = vmatprep.subr.mxu0 %v129_v9  ;;  %p2051_p0 = por %p2050_p13, %p2049_p12 }
  0x4a   :  { %1781 = vmatpush3.msra.mxu0 %v129_v9 }
  0x4b   :  { %1782 = vmatprep.subr.mxu0 %v128_v10  ;;  %p2052_p1 = pnand %p2051_p0, %p2045_p11 }
  0x4c   :  { %1783 = vmatpush3.msra.mxu0 %v128_v10 }
  0x4d   :  { %1784 = vmatprep.subr.mxu0 %v127_v11 }
  0x4e   :  { %1785 = vmatpush3.msra.mxu0 %v127_v11 }
  0x4f   :  { %1786 = vmatprep.subr.mxu0 %v126_v12 }
  0x50   :  { %1787 = vmatpush3.msra.mxu0 %v126_v12 }
  0x51   :  { %1788 = vmatprep.subr.mxu0 %v125_v13 }
  0x52   :  { %1789 = vmatpush3.msra.mxu0 %v125_v13 }
  0x53   :  { %1790 = vmatprep.subr.mxu0 %v124_v14 }
  0x54   :  { %1791 = vmatpush3.msra.mxu0 %v124_v14 }
  0x55   :  { %1792 = vmatprep.subr.mxu0 %v123_v15 }
  0x56   :  { %1793 = vmatpush3.msra.mxu0 %v123_v15 }
  0x57   :  { %1837 = vmatprep.subr.mxu0 %v2081_v26 }
  0xaf   :  { %v104_v17 = vpop.permute.xlu0 %103  ;;  %v112_v18 = vpop.permute.xlu1 %111 }
  0xb0   :  { %v118_v19 = vsel %vm117_vm0, %v95_v16, %v104_v17 }
  0xb1   :  { %v121_v20 = vsel %vm120_vm1, %v118_v19, %v112_v18 }
  0xb2   :  { %1794 = vmatprep.mubr.msk.f32.mxu0 %vm142_vm2, %v121_v20 }
  0xb3   :  { %v106_v22 = vpop.permute.xlu0 %105  ;;  %v114_v23 = vpop.permute.xlu1 %113 }
  0xb4   :  { %v119_v24 = vsel %vm117_vm0, %v96_v21, %v106_v22 }
  0xb5   :  { %v122_v25 = vsel %vm120_vm1, %v119_v24, %v114_v23 }
  0xb6   :  { %1795 = vmatmul.mubr.msk.f32.vlgmr.msra.gmra.mxu0 %vm142_vm2, %v122_v25 }
  0xb7   :  { %1839 = vmatprep.mubr.msk.f32.mxu0 %vm2082_vm3, %v2081_v26 }
 0x176   :  { %v1796_v28 = vpop.f32.mrf.mxu0 }
 0x177   :  { %v2179_v29 = vadd.f32 %v1796_v28, %v1688_v27 }
 0x178   :  { %v215_v30 = vpop.f32.mrf.mxu0 }
 0x179   :  { %v2181_v31 = vadd.f32 %v1688_v27, %v215_v30 }
 0x17b   :  { %225 = vrot.lane.b32.xlu0 %v2181_v31, %s2083_s27 }
 0x1ed   :  { %v226_v32 = vpop.permute.xlu0 %225 }
 0x1ee   :  { %1798 = vmatpush3.xpose.msk.msra.mxu1 %vm227_vm4, %v226_v32 }
 0x1ef   :  { %1802 = vmatprep.subr.mxu1 %v2081_v26 }
 0x1f1   :  { %1800 = vmatmul.mubr.msk.f32.vlgmr.msra.gmra.mxu1 %vm227_vm4, %v2181_v31 }
 0x1f2   :  { %1804 = vmatprep.mubr.msk.f32.mxu1 %vm2082_vm3, %v2081_v26 }
 0x2b1   :  { %v298_v33 = vpop.f32.mrf.mxu1 }
 0x2b2   :  { %v302_v34 = vsel %vm227_vm4, %v298_v33, -inf }
 0x2b3   :  { %303 = vmax.xlane.f32.xlu1 %v302_v34  ;;  %v1801_v35 = vpop.f32.mrf.mxu1 }
 0x2c4   :  { %391 = vrot.lane.b32.xlu1 %v2181_v31, %s2084_s4 }
 0x2c8   :  { %389 = vrot.lane.b32.xlu1 %v2181_v31, %s2085_s28 }
 0x33c   :  { %v304_v36 = vpop.xlane.xlu1 %303 }
 0x33d   :  { %v305_v37 = vsub.f32 %v298_v33, %v304_v36 }
 0x33f   :  { %v306_v38 = vmul.f32 1.442695, %v305_v37 }
 0x340   :  { %v392_v44 = vpop.permute.xlu1 %391 }
 0x341   :  { %1912 = vpow2.f32 %v306_v38 }
 0x344   :  { %v390_v46 = vpop.permute.xlu1 %389 }
 0x34e   :  { %v1913_v39 = vpop.eup %1912 }
 0x34f   :  { %v308_v40 = vsel %vm227_vm4, %v1913_v39, 0.0 }
 0x350   :  { %309 = vadd.xlane.f32.xlu0 %v308_v40 }
 0x366   :  { %313 = vrot.lane.b32.xlu0 %v2181_v31, %s2080_s25 }
 0x3d9   :  { %v310_v41 = vpop.xlane.xlu0 %309 }
 0x3da   :  { %1914 = vrcp.f32 %v310_v41 }
 0x3dd   :  { %v314_v42 = vpop.permute.xlu0 %313 }
 0x3de   :  { %1803 = vmatpush3.msra.mxu1 %v314_v42 }
 0x3df   :  { %1807 = vmatprep.subr.mxu1 %v2081_v26 }
 0x3e7   :  { %v1915_v43 = vpop.eup %1914 }
 0x3e8   :  { %v312_v45 = vmul.f32 %v1915_v43, %v1913_v39 }
 0x3ea   :  { %1805 = vmatmul.mubr.msk.f32.vlgmr.msra.gmra.mxu1 %vm227_vm4, %v312_v45 }
 0x3eb   :  { %1808 = vmatpush3.xpose.msk.msra.mxu1 %vm227_vm4, %v392_v44  ;;  %1809 = vmatprep.mubr.msk.f32.mxu1 %vm2082_vm3, %v2081_v26 }
 0x3ec   :  { %1812 = vmatprep.subr.mxu1 %v2081_v26 }
 0x3ee   :  { %1810 = vmatmul.mubr.msk.f32.vlgmr.msra.gmra.mxu1 %vm227_vm4, %v390_v46 }
 0x3ef   :  { %1814 = vmatprep.mubr.msk.f32.mxu1 %vm2082_vm3, %v2081_v26 }
 0x4aa   :  { %v2208_v47 = vpop.f32.mrf.mxu1 }
 0x4ac   :  { %v1806_v48 = vpop.f32.mrf.mxu1 }
 0x4ae   :  { %v463_v49 = vpop.f32.mrf.mxu1 }
 0x4af   :  { %v467_v50 = vsel %vm227_vm4, %v463_v49, -inf }
 0x4b0   :  { %468 = vmax.xlane.f32.xlu0 %v467_v50  ;;  %v1811_v51 = vpop.f32.mrf.mxu1 }
 0x4c6   :  { %478 = vrot.lane.b32.xlu0 %v2181_v31, %s2086_s8 }
 0x4ca   :  { %554 = vrot.lane.b32.xlu0 %v2181_v31, %s2087_s9 }
 0x539   :  { %v469_v52 = vpop.xlane.xlu0 %468 }
 0x53a   :  { %v470_v53 = vsub.f32 %v463_v49, %v469_v52 }
 0x53c   :  { %v471_v54 = vmul.f32 1.442695, %v470_v53 }
 0x53d   :  { %v479_v55 = vpop.permute.xlu0 %478 }
 0x53e   :  { %1916 = vpow2.f32 %v471_v54  ;;  %1813 = vmatpush3.msra.mxu1 %v479_v55 }
 0x53f   :  { %1817 = vmatprep.subr.mxu1 %v2081_v26 }
 0x541   :  { %v555_v62 = vpop.permute.xlu0 %554 }
 0x54b   :  { %v1917_v56 = vpop.eup %1916 }
 0x54c   :  { %v473_v57 = vsel %vm227_vm4, %v1917_v56, 0.0 }
 0x54d   :  { %474 = vadd.xlane.f32.xlu1 %v473_v57 }
 0x55e   :  { %556 = vrot.lane.b32.xlu1 %v2181_v31, %s2088_s10 }
 0x5d6   :  { %v475_v58 = vpop.xlane.xlu1 %474 }
 0x5d7   :  { %1918 = vrcp.f32 %v475_v58 }
 0x5da   :  { %v557_v61 = vpop.permute.xlu1 %556 }
 0x5e4   :  { %v1919_v59 = vpop.eup %1918 }
 0x5e5   :  { %v477_v60 = vmul.f32 %v1919_v59, %v1917_v56 }
 0x5e7   :  { %1815 = vmatmul.mubr.msk.f32.vlgmr.msra.gmra.mxu1 %vm227_vm4, %v477_v60 }
 0x5e8   :  { %1818 = vmatpush3.xpose.msk.msra.mxu1 %vm227_vm4, %v557_v61  ;;  %1819 = vmatprep.mubr.msk.f32.mxu1 %vm2082_vm3, %v2081_v26 }
 0x5e9   :  { %1822 = vmatprep.subr.mxu1 %v2081_v26 }
 0x5eb   :  { %1820 = vmatmul.mubr.msk.f32.vlgmr.msra.gmra.mxu1 %vm227_vm4, %v555_v62 }
 0x5ec   :  { %1824 = vmatprep.mubr.msk.f32.mxu1 %vm2082_vm3, %v2081_v26 }
 0x6a7   :  { %v2226_v63 = vpop.f32.mrf.mxu1 }
 0x6a9   :  { %v1816_v0 = vpop.f32.mrf.mxu1 }
 0x6ab   :  { %v628_v1 = vpop.f32.mrf.mxu1 }
 0x6ac   :  { %v632_v2 = vsel %vm227_vm4, %v628_v1, -inf }
 0x6ad   :  { %633 = vmax.xlane.f32.xlu1 %v632_v2  ;;  %v1821_v3 = vpop.f32.mrf.mxu1 }
 0x6be   :  { %721 = vrot.lane.b32.xlu1 %v2181_v31, %s2089_s11 }
 0x6c2   :  { %719 = vrot.lane.b32.xlu1 %v2181_v31, %s2090_s12 }
 0x6c6   :  { %1067 = vrot.lane.b32.xlu1 %v2179_v29, %s2084_s4 }
 0x6ca   :  { %1232 = vrot.lane.b32.xlu1 %v2179_v29, %s2088_s10 }
 0x6ce   :  { %1397 = vrot.lane.b32.xlu1 %v2179_v29, %s2089_s11 }
 0x736   :  { %v634_v4 = vpop.xlane.xlu1 %633 }
 0x737   :  { %v635_v5 = vsub.f32 %v628_v1, %v634_v4 }
 0x739   :  { %v636_v6 = vmul.f32 1.442695, %v635_v5 }
 0x73a   :  { %v722_v9 = vpop.permute.xlu1 %721 }
 0x73b   :  { %1920 = vpow2.f32 %v636_v6 }
 0x73e   :  { %v720_v11 = vpop.permute.xlu1 %719 }
 0x742   :  { %v1068_v13 = vpop.permute.xlu1 %1067 }
 0x746   :  { %v1233_v17 = vpop.permute.xlu1 %1232 }
 0x748   :  { %v1921_v7 = vpop.eup %1920 }
 0x749   :  { %v638_v8 = vsel %vm227_vm4, %v1921_v7, 0.0 }
 0x74a   :  { %639 = vadd.xlane.f32.xlu0 %v638_v8  ;;  %v1398_v20 = vpop.permute.xlu1 %1397 }
 0x760   :  { %643 = vrot.lane.b32.xlu0 %v2181_v31, %s2091_s13 }
 0x764   :  { %902 = vrot.lane.b32.xlu0 %v2179_v29, %s2083_s27 }
 0x768   :  { %1065 = vrot.lane.b32.xlu0 %v2179_v29, %s2085_s28 }
 0x76c   :  { %1230 = vrot.lane.b32.xlu0 %v2179_v29, %s2087_s9 }
 0x770   :  { %1395 = vrot.lane.b32.xlu0 %v2179_v29, %s2090_s12 }
 0x7d3   :  { %v640_v10 = vpop.xlane.xlu0 %639 }
 0x7d4   :  { %1922 = vrcp.f32 %v640_v10 }
 0x7d7   :  { %v644_v12 = vpop.permute.xlu0 %643 }
 0x7d8   :  { %1823 = vmatpush3.msra.mxu1 %v644_v12 }
 0x7d9   :  { %1827 = vmatprep.subr.mxu1 %v2081_v26 }
 0x7db   :  { %v903_v14 = vpop.permute.xlu0 %902 }
 0x7dc   :  { %1838 = vmatpush3.xpose.msk.msra.mxu0 %vm227_vm4, %v903_v14 }
 0x7dd   :  { %1847 = vmatprep.subr.mxu0 %v2081_v26 }
 0x7df   :  { %1840 = vmatmul.mubr.msk.f32.vlgmr.msra.gmra.mxu0 %vm227_vm4, %v2179_v29  ;;  %v1066_v15 = vpop.permute.xlu0 %1065 }
 0x7e0   :  { %1848 = vmatpush3.xpose.msk.msra.mxu0 %vm227_vm4, %v1068_v13  ;;  %1849 = vmatprep.mubr.msk.f32.mxu0 %vm2082_vm3, %v2081_v26 }
 0x7e1   :  { %v1923_v16 = vpop.eup %1922  ;;  %1857 = vmatprep.subr.mxu0 %v2081_v26 }
 0x7e2   :  { %v642_v18 = vmul.f32 %v1923_v16, %v1921_v7 }
 0x7e3   :  { %1850 = vmatmul.mubr.msk.f32.vlgmr.msra.gmra.mxu0 %vm227_vm4, %v1066_v15  ;;  %v1231_v19 = vpop.permute.xlu0 %1230 }
 0x7e4   :  { %1825 = vmatmul.mubr.msk.f32.vlgmr.msra.gmra.mxu1 %vm227_vm4, %v642_v18  ;;  %1858 = vmatpush3.xpose.msk.msra.mxu0 %vm227_vm4, %v1233_v17 }
 0x7e5   :  { %1828 = vmatpush3.xpose.msk.msra.mxu1 %vm227_vm4, %v722_v9  ;;  %1859 = vmatprep.mubr.msk.f32.mxu0 %vm2082_vm3, %v2081_v26 }
 0x7e6   :  { %1829 = vmatprep.mubr.msk.f32.mxu1 %vm2082_vm3, %v2081_v26  ;;  %1867 = vmatprep.subr.mxu0 %v2081_v26 }
 0x7e7   :  { %1860 = vmatmul.mubr.msk.f32.vlgmr.msra.gmra.mxu0 %vm227_vm4, %v1231_v19  ;;  %1832 = vmatprep.subr.mxu1 %v2081_v26  ;;  %v1396_v21 = vpop.permute.xlu0 %1395 }
 0x7e8   :  { %1830 = vmatmul.mubr.msk.f32.vlgmr.msra.gmra.mxu1 %vm227_vm4, %v720_v11  ;;  %1868 = vmatpush3.xpose.msk.msra.mxu0 %vm227_vm4, %v1398_v20 }
 0x7e9   :  { %1869 = vmatprep.mubr.msk.f32.mxu0 %vm2082_vm3, %v2081_v26  ;;  %1834 = vmatprep.mubr.msk.f32.mxu1 %vm2082_vm3, %v2081_v26 }
 0x7eb   :  { %1870 = vmatmul.mubr.msk.f32.vlgmr.msra.gmra.mxu0 %vm227_vm4, %v1396_v21 }
 0x89f   :  { %v974_v22 = vpop.f32.mrf.mxu0 }
 0x8a0   :  { %v978_v23 = vsel %vm227_vm4, %v974_v22, -inf }
 0x8a1   :  { %979 = vmax.xlane.f32.xlu0 %v978_v23  ;;  %v1841_v24 = vpop.f32.mrf.mxu0  ;;  %v1577_v23 = vld [vmem:[#allocation10 + $0x10] sm:$0xff] }
 0x8a3   :  { %v1139_v25 = vpop.f32.mrf.mxu0 }
 0x8a4   :  { %v715_v27 = vpop.f32.mrf.mxu1  ;;  %v1143_v28 = vsel %vm227_vm4, %v1139_v25, -inf }
 0x8a5   :  { %1144 = vmax.xlane.f32.xlu0 %v1143_v28  ;;  %v1851_v30 = vpop.f32.mrf.mxu0 }
 0x8a6   :  { %v1826_v32 = vpop.f32.mrf.mxu1 }
 0x8a7   :  { %v1304_v33 = vpop.f32.mrf.mxu0 }
 0x8a8   :  { %v793_v34 = vpop.f32.mrf.mxu1  ;;  %v1308_v41 = vsel %vm227_vm4, %v1304_v33, -inf }
 0x8a9   :  { %v1861_v35 = vpop.f32.mrf.mxu0  ;;  %v797_v36 = vsel %vm227_vm4, %v793_v34, -inf }
 0x8aa   :  { %798 = vmax.xlane.f32.xlu1 %v797_v36  ;;  %v1831_v37 = vpop.f32.mrf.mxu1 }
 0x8ab   :  { %v1469_v38 = vpop.f32.mrf.mxu0 }
 0x8ac   :  { %v1473_v39 = vsel %vm227_vm4, %v1469_v38, -inf }
 0x8ad   :  { %1474 = vmax.xlane.f32.xlu0 %v1473_v39  ;;  %v1871_v40 = vpop.f32.mrf.mxu0 }
 0x8ae   :  { %1309 = vmax.xlane.f32.xlu1 %v1308_v41 }
 0x92a   :  { %v980_v42 = vpop.xlane.xlu0 %979 }
 0x92b   :  { %v981_v43 = vsub.f32 %v974_v22, %v980_v42  ;;  %v1578_v22 = vld [vmem:[#allocation10 + $0x18] sm:$0xff] }
 0x92c   :  { %1877 = vmatprep.subr.mxu0 %v1578_v22 }
 0x92d   :  { %v982_v44 = vmul.f32 1.442695, %v981_v43  ;;  %1878 = vmatpush3.msra.mxu0 %v1578_v22 }
 0x92e   :  { %v1145_v45 = vpop.xlane.xlu0 %1144  ;;  %1879 = vmatprep.subr.mxu0 %v1577_v23 }
 0x92f   :  { %1924 = vpow2.f32 %v982_v44  ;;  %v1146_v46 = vsub.f32 %v1139_v25, %v1145_v45  ;;  %1880 = vmatpush3.msra.mxu0 %v1577_v23  ;;  %v1576_v25 = vld [vmem:[#allocation10 + $0x8] sm:$0xff] }
 0x930   :  { %1881 = vmatprep.subr.mxu0 %v1576_v25 }
 0x931   :  { %v1147_v48 = vmul.f32 1.442695, %v1146_v46  ;;  %1882 = vmatpush3.msra.mxu0 %v1576_v25 }
 0x933   :  { %1926 = vpow2.f32 %v1147_v48  ;;  %v799_v49 = vpop.xlane.xlu1 %798 }
 0x934   :  { %v800_v1 = vsub.f32 %v793_v34, %v799_v49 }
 0x936   :  { %v1475_v50 = vpop.xlane.xlu0 %1474  ;;  %v801_v2 = vmul.f32 1.442695, %v800_v1 }
 0x937   :  { %v1476_v51 = vsub.f32 %v1469_v38, %v1475_v50  ;;  %v1310_v52 = vpop.xlane.xlu1 %1309 }
 0x938   :  { %v1311_v53 = vsub.f32 %v1304_v33, %v1310_v52 }
 0x939   :  { %v1477_v54 = vmul.f32 1.442695, %v1476_v51  ;;  %v1715_v51 = vld [vmem:[%s2334_s6] ss:$0 sm:$0xff] }
 0x93a   :  { %v1312_v55 = vmul.f32 1.442695, %v1311_v53 }
 0x93b   :  { %1928 = vpow2.f32 %v1477_v54 }
 0x93c   :  { %v1925_v56 = vpop.eup %1924  ;;  %1930 = vpow2.f32 %v1312_v55 }
 0x93d   :  { %v984_v57 = vsel %vm227_vm4, %v1925_v56, 0.0  ;;  %1932 = vpow2.f32 %v801_v2 }
 0x93e   :  { %985 = vadd.xlane.f32.xlu0 %v984_v57 }
 0x940   :  { %v1927_v58 = vpop.eup %1926 }
 0x941   :  { %v1149_v59 = vsel %vm227_vm4, %v1927_v58, 0.0 }
 0x942   :  { %1150 = vadd.xlane.f32.xlu1 %v1149_v59 }
 0x948   :  { %v1929_v60 = vpop.eup %1928 }
 0x949   :  { %v1931_v61 = vpop.eup %1930  ;;  %v1479_v62 = vsel %vm227_vm4, %v1929_v60, 0.0 }
 0x94a   :  { %1480 = vadd.xlane.f32.xlu1 %v1479_v62  ;;  %v1314_v0 = vsel %vm227_vm4, %v1931_v61, 0.0  ;;  %v1933_v3 = vpop.eup %1932 }
 0x94b   :  { %1315 = vadd.xlane.f32.xlu0 %v1314_v0  ;;  %v803_v4 = vsel %vm227_vm4, %v1933_v3, 0.0 }
 0x95b   :  { %989 = vrot.lane.b32.xlu1 %v2179_v29, %s2080_s25 }
 0x961   :  { %808 = vrot.lane.b32.xlu0 %v2181_v31, %s2092_s14 }
 0x965   :  { %1319 = vrot.lane.b32.xlu0 %v2179_v29, %s2091_s13 }
 0x969   :  { %885 = vrot.lane.b32.xlu0 %v2226_v63, %s2075_s30 }
 0x97f   :  { %804 = vadd.xlane.f32.xlu1 %v803_v4 }
 0x990   :  { %1154 = vrot.lane.b32.xlu1 %v2179_v29, %s2086_s8 }
 0x994   :  { %1484 = vrot.lane.b32.xlu1 %v2179_v29, %s2092_s14 }
 0x998   :  { %889 = vrot.lane.b32.xlu1 %v715_v27, %s2093_s15  ;;  %v1575_v27 = vld [vmem:[#allocation10] sm:$0xff] }
 0x999   :  { %1883 = vmatprep.subr.mxu0 %v1575_v27 }
 0x99a   :  { %1884 = vmatpush3.msra.mxu0 %v1575_v27 }
 0x9c7   :  { %v986_v31 = vpop.xlane.xlu0 %985 }
 0x9cb   :  { %v1151_v63 = vpop.xlane.xlu1 %1150 }
 0x9d3   :  { %v1481_v7 = vpop.xlane.xlu1 %1480 }
 0x9d4   :  { %v1316_v5 = vpop.xlane.xlu0 %1315 }
 0x9d7   :  { %v990_v8 = vpop.permute.xlu1 %989 }
 0x9d8   :  { %v809_v6 = vpop.permute.xlu0 %808 }
 0x9d9   :  { %1833 = vmatpush3.msra.mxu1 %v809_v6 }
 0x9da   :  { %1842 = vmatprep.subr.mxu1 %v2081_v26 }
 0x9dc   :  { %v1320_v17 = vpop.permute.xlu0 %1319 }
 0x9e0   :  { %v886_v38 = vpop.permute.xlu0 %885 }
 0x9e1   :  { %v896_v40 = vsel %vm227_vm4, %v2208_v47, %v886_v38 }
 0xa08   :  { %v805_v9 = vpop.xlane.xlu1 %804 }
 0xa09   :  { %1934 = vrcp.f32 %v805_v9 }
 0xa0a   :  { %1936 = vrcp.f32 %v986_v31 }
 0xa0b   :  { %1938 = vrcp.f32 %v1151_v63 }
 0xa0c   :  { %1940 = vrcp.f32 %v1316_v5  ;;  %v1155_v14 = vpop.permute.xlu1 %1154 }
 0xa0d   :  { %1942 = vrcp.f32 %v1481_v7 }
 0xa10   :  { %v1485_v20 = vpop.permute.xlu1 %1484 }
 0xa14   :  { %v890_v39 = vpop.permute.xlu1 %889 }
 0xa15   :  { %v898_v41 = vsel %vm897_vm5, %v896_v40, %v890_v39 }
 0xa16   :  { %v1935_v10 = vpop.eup %1934 }
 0xa17   :  { %v807_v29 = vmul.f32 %v1935_v10, %v1933_v3  ;;  %v1937_v11 = vpop.eup %1936 }
 0xa18   :  { %v988_v12 = vmul.f32 %v1937_v11, %v1925_v56  ;;  %v1939_v13 = vpop.eup %1938 }
 0xa19   :  { %1835 = vmatmul.mubr.msk.f32.vlgmr.msra.gmra.mxu1 %vm227_vm4, %v807_v29  ;;  %v1153_v15 = vmul.f32 %v1939_v13, %v1927_v58  ;;  %v1941_v16 = vpop.eup %1940 }
 0xa1a   :  { %1843 = vmatpush3.msra.mxu1 %v990_v8  ;;  %1844 = vmatprep.mubr.msk.f32.mxu1 %vm2082_vm3, %v2081_v26  ;;  %v1318_v18 = vmul.f32 %v1941_v16, %v1931_v61  ;;  %v1943_v19 = vpop.eup %1942 }
 0xa1b   :  { %1852 = vmatprep.subr.mxu1 %v2081_v26  ;;  %v1483_v21 = vmul.f32 %v1943_v19, %v1929_v60 }
 0xa1d   :  { %1845 = vmatmul.mubr.msk.f32.vlgmr.msra.gmra.mxu1 %vm227_vm4, %v988_v12 }
 0xa1e   :  { %1853 = vmatpush3.msra.mxu1 %v1155_v14  ;;  %1854 = vmatprep.mubr.msk.f32.mxu1 %vm2082_vm3, %v2081_v26 }
 0xa1f   :  { %1862 = vmatprep.subr.mxu1 %v2081_v26 }
 0xa21   :  { %1855 = vmatmul.mubr.msk.f32.vlgmr.msra.gmra.mxu1 %vm227_vm4, %v1153_v15 }
 0xa22   :  { %1863 = vmatpush3.msra.mxu1 %v1320_v17  ;;  %1864 = vmatprep.mubr.msk.f32.mxu1 %vm2082_vm3, %v2081_v26 }
 0xa23   :  { %1872 = vmatprep.subr.mxu1 %v2081_v26 }
 0xa25   :  { %1865 = vmatmul.mubr.msk.f32.vlgmr.msra.gmra.mxu1 %vm227_vm4, %v1318_v18 }
 0xa26   :  { %1873 = vmatpush3.msra.mxu1 %v1485_v20  ;;  %1874 = vmatprep.mubr.msk.f32.mxu1 %vm2082_vm3, %v2081_v26 }
 0xa29   :  { %1875 = vmatmul.mubr.msk.f32.vlgmr.msra.gmra.mxu1 %vm227_vm4, %v1483_v21 }
 0xad9   :  { %v880_v24 = vpop.f32.mrf.mxu1 }
 0xada   :  { %893 = vrot.lane.b32.xlu1 %v880_v24, %s2094_s16 }
 0xadb   :  { %v1836_v28 = vpop.f32.mrf.mxu1 }
 0xadd   :  { %v1061_v30 = vpop.f32.mrf.mxu1 }
 0xadf   :  { %v1846_v26 = vpop.f32.mrf.mxu1 }
 0xae1   :  { %v1226_v32 = vpop.f32.mrf.mxu1 }
 0xae2   :  { %1561 = vrot.lane.b32.xlu0 %v1226_v32, %s2075_s30 }
 0xae3   :  { %v1856_v33 = vpop.f32.mrf.mxu1 }
 0xae5   :  { %v1391_v34 = vpop.f32.mrf.mxu1 }
 0xae6   :  { %1565 = vrot.lane.b32.xlu0 %v1391_v34, %s2093_s15 }
 0xae7   :  { %v1866_v35 = vpop.f32.mrf.mxu1 }
 0xae9   :  { %v1556_v36 = vpop.f32.mrf.mxu1 }
 0xaea   :  { %1569 = vrot.lane.b32.xlu1 %v1556_v36, %s2094_s16 }
 0xaeb   :  { %v1876_v37 = vpop.f32.mrf.mxu1 }
 0xb4c   :  { %v894_v42 = vpop.permute.xlu1 %893 }
 0xb4d   :  { %v900_v43 = vsel %vm899_vm6, %v898_v41, %v894_v42 }
 0xb4e   :  { %1885 = vmatprep.mubr.msk.f32.mxu0 %vm117_vm0, %v900_v43 }
 0xb54   :  { %v1562_v44 = vpop.permute.xlu0 %1561 }
 0xb55   :  { %v1572_v46 = vsel %vm227_vm4, %v1061_v30, %v1562_v44 }
 0xb58   :  { %v1566_v45 = vpop.permute.xlu0 %1565 }
 0xb59   :  { %v1573_v48 = vsel %vm897_vm5, %v1572_v46, %v1566_v45 }
 0xb5c   :  { %v1570_v49 = vpop.permute.xlu1 %1569 }
 0xb5d   :  { %v1574_v50 = vsel %vm899_vm6, %v1573_v48, %v1570_v49 }
 0xb5e   :  { %1886 = vmatmul.mubr.msk.f32.vlgmr.msra.gmra.mxu0 %vm117_vm0, %v1574_v50 }
 0xc1e   :  { %v1887_v52 = vpop.f32.mrf.mxu0 }
 0xc1f   :  { %v1664_v47 = vadd.f32 %v1887_v52, %v1715_v51 }
 0xc20   :  { %v1658_v53 = vpop.f32.mrf.mxu0 }
 0xc21   :  { %1668 = vst.msk [vmem:[#allocation11 + $0x8] sm:$0xff] %vm117_vm0, %v1664_v47  ;;  %v1659_v54 = vadd.f32 %v1715_v51, %v1658_v53 }
 0xc23   :  { %1667 = vst.msk [vmem:[#allocation11] sm:$0xff] %vm117_vm0, %v1659_v54 }
 0xc24   :  { %2055 = shalt.err (!%p2052_p1)
}
 0xc25   :  { %1680 = dma.vmem_to_hbm [thread:$0]  %s1675_s3, 256, %s2335_s7, [#allocation4], %s2074_s29, %s2074_s29, %s2075_s30  }
 0xc26   :  { %2070 = dma.done.wait [#allocation4], 256  }
 0xc27   :  { %2071 = vsyncadd [#allocation4], 4294967040 }
 0xc28   :  { %1684 = vsyncpa [#allocation3], 1 }
 0xc29   :  { %1685 = vsyncpa [#allocation6], 1 }
 0xc2a   :  { %1686 = vsyncpa [#allocation9], 1 }
 0xc2b   :  { %1687 = vsyncpa [#allocation4], 1 }

</bundles_post_ra>
